<compile_context>
chip_gen: v5e
topology: v5e:2x2
jax: 0.10.0
libtpu: 0.0.40
codegen_flags: <defaults>
</compile_context>

<pallas_src>
import functools

import numpy as np
import jax
import jax.numpy as jnp
from jax import lax
from jax.experimental import pallas as pl
from jax.experimental.pallas import tpu as pltpu

MXU_DTYPE = jnp.bfloat16     # MXU operand dtype (f32 accumulation everywhere)
Y_DTYPE = jnp.bfloat16       # conv intermediate; BN stats use the f32 acc
LANE = 128
SUBPACK = 16                 # bf16-friendly sublane alignment for the width


def _round_up(x, m):
    return (x + m - 1) // m * m


def _choose_th(H, Wh, target_rows=256):
    """Largest divisor of H with TH*Wh <= target_rows (>= 1)."""
    th = 1
    for cand in range(1, H + 1):
        if H % cand == 0 and cand * Wh <= target_rows:
            th = cand
    return th


# ----------------------------------------------------------------------------
# Kernel 1: 3x3 conv as 3 GEMMs (dh folded into K, dw via XLU roll)
#           + fused, column-masked BN batch statistics (sum, sum of squares)
# ----------------------------------------------------------------------------
def _conv3x3_stats_kernel(x_ref, w_ref, y_ref, s1_ref, s2_ref, *, W, Wh):
    # x_ref : (1, TH*Wh, 3*Cin)  bf16   dh-stacked, width-padded image rows
    # w_ref : (3, 3*Cin, TC)     bf16   weight, leading dim = dw tap
    # y_ref : (1, TH*Wh, TC)     bf16   conv output chunk (cols >= W are junk)
    # s1/s2 : (1, 1, TC)         f32    per-(image, channel-tile) sum / sum-sq
    ht = pl.program_id(2)
    mc, tc = y_ref.shape[1], y_ref.shape[2]
    th = mc // Wh

    # dw = 0 tap: no shift.
    acc = jnp.dot(x_ref[0], w_ref[0], preferred_element_type=jnp.float32)
    # dw = 1, 2 taps: sublane roll (XLU) of the flattened row axis; wrap-around
    # only pollutes output columns >= W, which are masked / cropped later.
    x32 = x_ref[0].astype(jnp.float32)
    for dw in (1, 2):
        shifted = pltpu.roll(x32, mc - dw, 0).astype(MXU_DTYPE)
        acc = acc + jnp.dot(shifted, w_ref[dw],
                            preferred_element_type=jnp.float32)

    y_ref[0] = acc.astype(y_ref.dtype)

    # BN batch statistics over the VALID columns only (w < W), from the f32 acc.
    acc3 = acc.reshape(th, Wh, tc)                      # layout-preserving
    valid = lax.broadcasted_iota(jnp.int32, (1, Wh, 1), 1) < W
    z = jnp.where(valid, acc3, 0.0)
    ps1 = jnp.sum(z, axis=(0, 1), keepdims=True)        # (1, 1, TC)
    ps2 = jnp.sum(z * z, axis=(0, 1), keepdims=True)

    @pl.when(ht == 0)
    def _():
        s1_ref[...] = jnp.zeros_like(s1_ref)
        s2_ref[...] = jnp.zeros_like(s2_ref)

    s1_ref[...] += ps1
    s2_ref[...] += ps2


# ----------------------------------------------------------------------------
# Kernel 2: fused BN normalize + affine + ReLU + sigmoid(weight) scale
#           out = relu(y * A + B), A/B per-channel (scale folded, s > 0),
#           emitted as width-cropped NHWC f32.
# ----------------------------------------------------------------------------
def _bn_relu_kernel(y_ref, a_ref, b_ref, o_ref, *, W, Wh):
    # y_ref : (1, TH*Wh, C) bf16 ; a/b : (1, C) f32 ; o_ref : (1, TH, W, C) f32
    th, c = o_ref.shape[1], o_ref.shape[3]
    y = y_ref[0].astype(jnp.float32)
    z = jnp.maximum(y * a_ref[...] + b_ref[...], 0.0)
    o_ref[0] = z.reshape(th, Wh, c)[:, :W, :].astype(o_ref.dtype)


# ----------------------------------------------------------------------------
# adap_conv forward (NCHW in / NCHW out, like the PyTorch module)
# ----------------------------------------------------------------------------
def adap_conv_fwd(x_nchw, p):
    N, Cin, H, W = x_nchw.shape
    Cout = p['conv_w'].shape[0]
    Cout_p = _round_up(Cout, LANE)
    TC = LANE
    J = Cout_p // TC
    Wh = _round_up(W + 2, SUBPACK)        # halo'd + sublane-aligned width
    TH = _choose_th(H, Wh)                # row-chunk height (divides H)
    HT = H // TH
    MC = TH * Wh                          # M rows per grid step

    # --- one-time boundary layout: NCHW -> dh-stacked, width-padded rows ----
    # x_stk[n, h*Wh + w, dh*Cin + c] = x_padded[n, h + dh, w, c]
    x = jnp.transpose(x_nchw, (0, 2, 3, 1))                     # NHWC
    x = jnp.pad(x, ((0, 0), (1, 1), (1, Wh - W - 1), (0, 0)))   # (N,H+2,Wh,Cin)
    x = jnp.concatenate([x[:, dh:dh + H] for dh in range(3)], axis=-1)
    x = x.reshape(N, H * Wh, 3 * Cin).astype(MXU_DTYPE)

    # weight (Cout, Cin, 3, 3) -> (dw, dh*Cin + c, Cout_p); conv bias dropped
    # (exactly cancelled by train-mode BN mean subtraction).
    w = jnp.transpose(p['conv_w'], (3, 2, 1, 0)).reshape(3, 3 * Cin, Cout)
    w = jnp.pad(w, ((0, 0), (0, 0), (0, Cout_p - Cout))).astype(MXU_DTYPE)

    conv_call = pl.pallas_call(
        functools.partial(_conv3x3_stats_kernel, W=W, Wh=Wh),
        grid=(N, J, HT),
        in_specs=[
            pl.BlockSpec((1, MC, 3 * Cin), lambda n, j, ht: (n, ht, 0)),
            pl.BlockSpec((3, 3 * Cin, TC), lambda n, j, ht: (0, 0, j)),
        ],
        out_specs=(
            pl.BlockSpec((1, MC, TC), lambda n, j, ht: (n, ht, j)),
            pl.BlockSpec((1, 1, TC), lambda n, j, ht: (n, 0, j)),
            pl.BlockSpec((1, 1, TC), lambda n, j, ht: (n, 0, j)),
        ),
        out_shape=(
            jax.ShapeDtypeStruct((N, H * Wh, Cout_p), Y_DTYPE),
            jax.ShapeDtypeStruct((N, 1, Cout_p), jnp.float32),
            jax.ShapeDtypeStruct((N, 1, Cout_p), jnp.float32),
        ),
        compiler_params=pltpu.CompilerParams(
            dimension_semantics=("parallel", "parallel", "arbitrary"),
            vmem_limit_bytes=32 * 1024 * 1024),
    )
    y, s1, s2 = conv_call(x, w)

    # --- finalize BN batch stats (train mode, biased variance) and fold
    #     gamma/beta/invstd and sigmoid(weight) into one per-channel A/B ------
    cnt = float(N * H * W)
    mean = jnp.sum(s1, axis=(0, 1)) / cnt
    ex2 = jnp.sum(s2, axis=(0, 1)) / cnt
    var = jnp.maximum(ex2 - mean * mean, 0.0)
    invstd = lax.rsqrt(var + p['bn_eps'])
    gamma = jnp.pad(p['bn_gamma'], (0, Cout_p - Cout))
    beta = jnp.pad(p['bn_beta'], (0, Cout_p - Cout))
    s = jax.nn.sigmoid(p['adap_weight'][0])             # runtime, sigmoid(w) > 0
    A = (gamma * invstd * s).reshape(1, Cout_p).astype(jnp.float32)
    B = ((beta - mean * gamma * invstd) * s).reshape(1, Cout_p).astype(jnp.float32)

    bn_call = pl.pallas_call(
        functools.partial(_bn_relu_kernel, W=W, Wh=Wh),
        grid=(N, HT),
        in_specs=[
            pl.BlockSpec((1, MC, Cout_p), lambda n, ht: (n, ht, 0)),
            pl.BlockSpec((1, Cout_p), lambda n, ht: (0, 0)),
            pl.BlockSpec((1, Cout_p), lambda n, ht: (0, 0)),
        ],
        out_specs=pl.BlockSpec((1, TH, W, Cout_p), lambda n, ht: (n, ht, 0, 0)),
        out_shape=jax.ShapeDtypeStruct((N, H, W, Cout_p), jnp.float32),
        compiler_params=pltpu.CompilerParams(
            dimension_semantics=("parallel", "parallel"),
            vmem_limit_bytes=32 * 1024 * 1024),
    )
    out = bn_call(y, A, B)

    out = out[:, :, :, :Cout]
    return jnp.transpose(out, (0, 3, 1, 2))             # back to NCHW


# ----------------------------------------------------------------------------
# Parameters (mirrors the PyTorch module: conv w/b, BN affine, scalar weight=0)
# ----------------------------------------------------------------------------
def init_params(key, cin, cout):
    k1, k2 = jax.random.split(key)
    return {
        'conv_w': 0.05 * jax.random.normal(k1, (cout, cin, 3, 3), jnp.float32),
        'conv_b': 0.01 * jax.random.normal(k2, (cout,), jnp.float32),
        'bn_gamma': jnp.ones((cout,), jnp.float32),
        'bn_beta': jnp.zeros((cout,), jnp.float32),
        'bn_eps': 1e-5,
        'adap_weight': jnp.zeros((1,), jnp.float32),     # nn.Parameter([0.0])
    }


# ----------------------------------------------------------------------------
# Pure-JAX reference (faithful to the PyTorch module, bias included)
# ----------------------------------------------------------------------------
def adap_conv_ref(x, p):
    y = jax.lax.conv_general_dilated(
        x, p['conv_w'], window_strides=(1, 1), padding=((1, 1), (1, 1)),
        dimension_numbers=('NCHW', 'OIHW', 'NCHW'),
        precision=jax.lax.Precision.HIGHEST)
    y = y + p['conv_b'].reshape(1, -1, 1, 1)
    mean = jnp.mean(y, axis=(0, 2, 3), keepdims=True)
    var = jnp.mean(jnp.square(y - mean), axis=(0, 2, 3), keepdims=True)
    yhat = (y - mean) * jax.lax.rsqrt(var + p['bn_eps'])
    yhat = yhat * p['bn_gamma'].reshape(1, -1, 1, 1) \
        + p['bn_beta'].reshape(1, -1, 1, 1)
    return jnp.maximum(yhat, 0.0) * jax.nn.sigmoid(p['adap_weight'][0])


if __name__ == "__main__":
    root = jax.random.PRNGKey(0)
    pkey, xkey = jax.random.split(root)

    N, Cin, Cout, H, W = 2, 4, 8, 16, 16
    params = init_params(pkey, Cin, Cout)
    x = jax.random.normal(xkey, (N, Cin, H, W), jnp.float32)

    fwd = jax.jit(adap_conv_fwd)
    out = jax.block_until_ready(fwd(x, params))

    assert out.shape == (N, Cout, H, W), out.shape
    assert bool(jnp.all(jnp.isfinite(out)))

    ref = jax.block_until_ready(adap_conv_ref(x, params))
    np.testing.assert_allclose(np.asarray(out), np.asarray(ref),
                               atol=2e-2, rtol=2e-2)
    print("KERNEL_OK")
</pallas_src>

<mosaic_0001>
module attributes {stable_mosaic.version = 11 : i64} {
  func.func @_conv3x3_stats_kernel(%arg0: i32, %arg1: i32, %arg2: i32, %arg3: memref<1x256x12xbf16, #tpu.memory_space<vmem>>, %arg4: memref<3x12x128xbf16, #tpu.memory_space<vmem>>, %arg5: memref<1x256x128xbf16, #tpu.memory_space<vmem>>, %arg6: memref<1x1x128xf32, #tpu.memory_space<vmem>>, %arg7: memref<1x1x128xf32, #tpu.memory_space<vmem>>) attributes {dimension_semantics = [#tpu.dimension_semantics<parallel>, #tpu.dimension_semantics<parallel>, #tpu.dimension_semantics<arbitrary>], iteration_bounds = array<i64: 2, 1, 2>, scalar_prefetch = 0 : i64, scratch_operands = 0 : i64, tpu.core_type = #tpu.core_type<tc>, window_params = [{transform_indices = @transform_0, window_bounds = array<i64: 1, 256, 12>}, {transform_indices = @transform_1, window_bounds = array<i64: 3, 12, 128>}, {transform_indices = @transform_2, window_bounds = array<i64: 1, 256, 128>}, {transform_indices = @transform_3, window_bounds = array<i64: 1, 1, 128>}, {transform_indices = @transform_4, window_bounds = array<i64: 1, 1, 128>}]} {
    %c0 = arith.constant 0 : index
    %c0_0 = arith.constant 0 : index
    %c0_1 = arith.constant 0 : index
    %0 = vector.load %arg3[%c0, %c0_0, %c0_1] : memref<1x256x12xbf16, #tpu.memory_space<vmem>>, vector<1x256x12xbf16>
    %1 = vector.shape_cast %0 : vector<1x256x12xbf16> to vector<256x12xbf16>
    %c0_2 = arith.constant 0 : index
    %c0_3 = arith.constant 0 : index
    %c0_4 = arith.constant 0 : index
    %2 = vector.load %arg4[%c0_2, %c0_3, %c0_4] : memref<3x12x128xbf16, #tpu.memory_space<vmem>>, vector<1x12x128xbf16>
    %3 = vector.shape_cast %2 : vector<1x12x128xbf16> to vector<12x128xbf16>
    %cst = arith.constant dense<0.000000e+00> : vector<256x128xf32>
    %4 = tpu.matmul %1, %3, %cst {dimension_numbers = #tpu.dot_dimension_numbers<[1], [0], [0], [1], [0, 0, 1, 1], [], []>} : vector<256x12xbf16>, vector<12x128xbf16>, vector<256x128xf32> -> vector<256x128xf32>
    %c0_5 = arith.constant 0 : index
    %c0_6 = arith.constant 0 : index
    %c0_7 = arith.constant 0 : index
    %5 = vector.load %arg3[%c0_5, %c0_6, %c0_7] : memref<1x256x12xbf16, #tpu.memory_space<vmem>>, vector<1x256x12xbf16>
    %6 = vector.shape_cast %5 : vector<1x256x12xbf16> to vector<256x12xbf16>
    %7 = arith.extf %6 : vector<256x12xbf16> to vector<256x12xf32>
    %c255_i32 = arith.constant 255 : i32
    %8 = tpu.dynamic_rotate %7 by %c255_i32 dim 0 : vector<256x12xf32>, i32 -> vector<256x12xf32>
    %9 = arith.truncf %8 : vector<256x12xf32> to vector<256x12xbf16>
    %c1 = arith.constant 1 : index
    %c0_8 = arith.constant 0 : index
    %c0_9 = arith.constant 0 : index
    %10 = vector.load %arg4[%c1, %c0_8, %c0_9] : memref<3x12x128xbf16, #tpu.memory_space<vmem>>, vector<1x12x128xbf16>
    %11 = vector.shape_cast %10 : vector<1x12x128xbf16> to vector<12x128xbf16>
    %cst_10 = arith.constant dense<0.000000e+00> : vector<256x128xf32>
    %12 = tpu.matmul %9, %11, %cst_10 {dimension_numbers = #tpu.dot_dimension_numbers<[1], [0], [0], [1], [0, 0, 1, 1], [], []>} : vector<256x12xbf16>, vector<12x128xbf16>, vector<256x128xf32> -> vector<256x128xf32>
    %13 = arith.addf %4, %12 : vector<256x128xf32>
    %c254_i32 = arith.constant 254 : i32
    %14 = tpu.dynamic_rotate %7 by %c254_i32 dim 0 : vector<256x12xf32>, i32 -> vector<256x12xf32>
    %15 = arith.truncf %14 : vector<256x12xf32> to vector<256x12xbf16>
    %c2 = arith.constant 2 : index
    %c0_11 = arith.constant 0 : index
    %c0_12 = arith.constant 0 : index
    %16 = vector.load %arg4[%c2, %c0_11, %c0_12] : memref<3x12x128xbf16, #tpu.memory_space<vmem>>, vector<1x12x128xbf16>
    %17 = vector.shape_cast %16 : vector<1x12x128xbf16> to vector<12x128xbf16>
    %cst_13 = arith.constant dense<0.000000e+00> : vector<256x128xf32>
    %18 = tpu.matmul %15, %17, %cst_13 {dimension_numbers = #tpu.dot_dimension_numbers<[1], [0], [0], [1], [0, 0, 1, 1], [], []>} : vector<256x12xbf16>, vector<12x128xbf16>, vector<256x128xf32> -> vector<256x128xf32>
    %19 = arith.addf %13, %18 : vector<256x128xf32>
    %20 = arith.truncf %19 : vector<256x128xf32> to vector<256x128xbf16>
    %c0_14 = arith.constant 0 : index
    %c0_15 = arith.constant 0 : index
    %c0_16 = arith.constant 0 : index
    %21 = vector.load %arg5[%c0_14, %c0_15, %c0_16] : memref<1x256x128xbf16, #tpu.memory_space<vmem>>, vector<1x256x128xbf16>
    %22 = vector.shape_cast %21 : vector<1x256x128xbf16> to vector<256x128xbf16>
    %23 = vector.shape_cast %20 : vector<256x128xbf16> to vector<1x256x128xbf16>
    tpu.vector_store %arg5[%c0_14, %c0_15, %c0_16], %23 {strides = array<i32>} : memref<1x256x128xbf16, #tpu.memory_space<vmem>>, vector<1x256x128xbf16>,
    %24 = vector.shape_cast %19 : vector<256x128xf32> to vector<8x32x128xf32>
    %25 = tpu.iota {dimensions = array<i32: 1>} : vector<1x32x1xi32>
    %c16_i32 = arith.constant 16 : i32
    %26 = vector.broadcast %c16_i32 : i32 to vector<1x32x1xi32>
    %27 = arith.cmpi slt, %25, %26 : vector<1x32x1xi32>
    %cst_17 = arith.constant 0.000000e+00 : f32
    %28 = vector.shape_cast %27 : vector<1x32x1xi1> to vector<1x32x1xi1>
    %29 = vector.broadcast %28 : vector<1x32x1xi1> to vector<8x32x128xi1>
    %30 = vector.broadcast %cst_17 : f32 to vector<8x32x128xf32>
    %31 = arith.select %29, %24, %30 : vector<8x32x128xi1>, vector<8x32x128xf32>
    %cst_18 = arith.constant dense<0.000000e+00> : vector<128xf32>
    %32 = vector.multi_reduction <add>, %31, %cst_18 [0, 1] : vector<8x32x128xf32> to vector<128xf32>
    %33 = vector.shape_cast %32 : vector<128xf32> to vector<1x1x128xf32>
    %34 = arith.mulf %31, %31 : vector<8x32x128xf32>
    %cst_19 = arith.constant dense<0.000000e+00> : vector<128xf32>
    %35 = vector.multi_reduction <add>, %34, %cst_19 [0, 1] : vector<8x32x128xf32> to vector<128xf32>
    %36 = vector.shape_cast %35 : vector<128xf32> to vector<1x1x128xf32>
    %c0_i32 = arith.constant 0 : i32
    %37 = arith.cmpi eq, %arg2, %c0_i32 : i32
    %38 = arith.extui %37 : i1 to i32
    %c0_i32_20 = arith.constant 0 : i32
    %39 = arith.cmpi ne, %38, %c0_i32_20 : i32
    scf.if %39 {
      %cst_33 = arith.constant 0.000000e+00 : f32
      %46 = vector.broadcast %cst_33 : f32 to vector<1x1x128xf32>
      %c0_34 = arith.constant 0 : index
      %c0_35 = arith.constant 0 : index
      %c0_36 = arith.constant 0 : index
      %47 = vector.load %arg6[%c0_34, %c0_35, %c0_36] : memref<1x1x128xf32, #tpu.memory_space<vmem>>, vector<1x1x128xf32>
      tpu.vector_store %arg6[%c0_34, %c0_35, %c0_36], %46 {strides = array<i32>} : memref<1x1x128xf32, #tpu.memory_space<vmem>>, vector<1x1x128xf32>,
      %cst_37 = arith.constant 0.000000e+00 : f32
      %48 = vector.broadcast %cst_37 : f32 to vector<1x1x128xf32>
      %c0_38 = arith.constant 0 : index
      %c0_39 = arith.constant 0 : index
      %c0_40 = arith.constant 0 : index
      %49 = vector.load %arg7[%c0_38, %c0_39, %c0_40] : memref<1x1x128xf32, #tpu.memory_space<vmem>>, vector<1x1x128xf32>
      tpu.vector_store %arg7[%c0_38, %c0_39, %c0_40], %48 {strides = array<i32>} : memref<1x1x128xf32, #tpu.memory_space<vmem>>, vector<1x1x128xf32>,
    } else {
    }
    %c0_21 = arith.constant 0 : index
    %c0_22 = arith.constant 0 : index
    %c0_23 = arith.constant 0 : index
    %40 = vector.load %arg6[%c0_21, %c0_22, %c0_23] : memref<1x1x128xf32, #tpu.memory_space<vmem>>, vector<1x1x128xf32>
    %41 = arith.addf %40, %33 : vector<1x1x128xf32>
    %c0_24 = arith.constant 0 : index
    %c0_25 = arith.constant 0 : index
    %c0_26 = arith.constant 0 : index
    %42 = vector.load %arg6[%c0_24, %c0_25, %c0_26] : memref<1x1x128xf32, #tpu.memory_space<vmem>>, vector<1x1x128xf32>
    tpu.vector_store %arg6[%c0_24, %c0_25, %c0_26], %41 {strides = array<i32>} : memref<1x1x128xf32, #tpu.memory_space<vmem>>, vector<1x1x128xf32>,
    %c0_27 = arith.constant 0 : index
    %c0_28 = arith.constant 0 : index
    %c0_29 = arith.constant 0 : index
    %43 = vector.load %arg7[%c0_27, %c0_28, %c0_29] : memref<1x1x128xf32, #tpu.memory_space<vmem>>, vector<1x1x128xf32>
    %44 = arith.addf %43, %36 : vector<1x1x128xf32>
    %c0_30 = arith.constant 0 : index
    %c0_31 = arith.constant 0 : index
    %c0_32 = arith.constant 0 : index
    %45 = vector.load %arg7[%c0_30, %c0_31, %c0_32] : memref<1x1x128xf32, #tpu.memory_space<vmem>>, vector<1x1x128xf32>
    tpu.vector_store %arg7[%c0_30, %c0_31, %c0_32], %44 {strides = array<i32>} : memref<1x1x128xf32, #tpu.memory_space<vmem>>, vector<1x1x128xf32>,
    return
  }
  func.func @transform_0(%arg0: i32, %arg1: i32, %arg2: i32) -> (i32, i32, i32) {
    %c0_i32 = arith.constant 0 : i32
    %c0_i32_0 = arith.constant 0 : i32
    return %arg0, %arg2, %c0_i32 : i32, i32, i32
  }
  func.func @transform_1(%arg0: i32, %arg1: i32, %arg2: i32) -> (i32, i32, i32) {
    %c0_i32 = arith.constant 0 : i32
    %c0_i32_0 = arith.constant 0 : i32
    %c0_i32_1 = arith.constant 0 : i32
    return %c0_i32, %c0_i32_0, %arg1 : i32, i32, i32
  }
  func.func @transform_2(%arg0: i32, %arg1: i32, %arg2: i32) -> (i32, i32, i32) {
    %c0_i32 = arith.constant 0 : i32
    return %arg0, %arg2, %arg1 : i32, i32, i32
  }
  func.func @transform_3(%arg0: i32, %arg1: i32, %arg2: i32) -> (i32, i32, i32) {
    %c0_i32 = arith.constant 0 : i32
    %c0_i32_0 = arith.constant 0 : i32
    return %arg0, %c0_i32, %arg1 : i32, i32, i32
  }
  func.func @transform_4(%arg0: i32, %arg1: i32, %arg2: i32) -> (i32, i32, i32) {
    %c0_i32 = arith.constant 0 : i32
    %c0_i32_0 = arith.constant 0 : i32
    return %arg0, %c0_i32, %arg1 : i32, i32, i32
  }
}

module attributes {stable_mosaic.version = 11 : i64} {
  func.func @_bn_relu_kernel(%arg0: i32, %arg1: i32, %arg2: memref<1x256x128xbf16, #tpu.memory_space<vmem>>, %arg3: memref<1x128xf32, #tpu.memory_space<vmem>>, %arg4: memref<1x128xf32, #tpu.memory_space<vmem>>, %arg5: memref<1x8x16x128xf32, #tpu.memory_space<vmem>>) attributes {dimension_semantics = [#tpu.dimension_semantics<parallel>, #tpu.dimension_semantics<parallel>], iteration_bounds = array<i64: 2, 2>, scalar_prefetch = 0 : i64, scratch_operands = 0 : i64, tpu.core_type = #tpu.core_type<tc>, window_params = [{transform_indices = @transform_0, window_bounds = array<i64: 1, 256, 128>}, {pipeline_mode = #tpu.pipeline_mode<synchronous>, transform_indices = @transform_1, window_bounds = array<i64: 1, 128>}, {pipeline_mode = #tpu.pipeline_mode<synchronous>, transform_indices = @transform_2, window_bounds = array<i64: 1, 128>}, {transform_indices = @transform_3, window_bounds = array<i64: 1, 8, 16, 128>}]} {
    %c0 = arith.constant 0 : index
    %c0_0 = arith.constant 0 : index
    %c0_1 = arith.constant 0 : index
    %0 = vector.load %arg2[%c0, %c0_0, %c0_1] : memref<1x256x128xbf16, #tpu.memory_space<vmem>>, vector<1x256x128xbf16>
    %1 = vector.shape_cast %0 : vector<1x256x128xbf16> to vector<256x128xbf16>
    %2 = arith.extf %1 : vector<256x128xbf16> to vector<256x128xf32>
    %c0_2 = arith.constant 0 : index
    %c0_3 = arith.constant 0 : index
    %3 = vector.load %arg3[%c0_2, %c0_3] : memref<1x128xf32, #tpu.memory_space<vmem>>, vector<1x128xf32>
    %4 = vector.broadcast %3 : vector<1x128xf32> to vector<256x128xf32>
    %5 = arith.mulf %2, %4 : vector<256x128xf32>
    %c0_4 = arith.constant 0 : index
    %c0_5 = arith.constant 0 : index
    %6 = vector.load %arg4[%c0_4, %c0_5] : memref<1x128xf32, #tpu.memory_space<vmem>>, vector<1x128xf32>
    %7 = vector.broadcast %6 : vector<1x128xf32> to vector<256x128xf32>
    %8 = arith.addf %5, %7 : vector<256x128xf32>
    %cst = arith.constant 0.000000e+00 : f32
    %9 = vector.broadcast %cst : f32 to vector<256x128xf32>
    %10 = arith.maximumf %8, %9 : vector<256x128xf32>
    %11 = vector.shape_cast %10 : vector<256x128xf32> to vector<8x32x128xf32>
    %12 = vector.extract_strided_slice %11 {offsets = [0, 0, 0], sizes = [8, 16, 128], strides = [1, 1, 1]} : vector<8x32x128xf32> to vector<8x16x128xf32>
    %c0_6 = arith.constant 0 : index
    %c0_7 = arith.constant 0 : index
    %c0_8 = arith.constant 0 : index
    %c0_9 = arith.constant 0 : index
    %13 = vector.load %arg5[%c0_6, %c0_7, %c0_8, %c0_9] : memref<1x8x16x128xf32, #tpu.memory_space<vmem>>, vector<1x8x16x128xf32>
    %14 = vector.shape_cast %13 : vector<1x8x16x128xf32> to vector<8x16x128xf32>
    %15 = vector.shape_cast %12 : vector<8x16x128xf32> to vector<1x8x16x128xf32>
    tpu.vector_store %arg5[%c0_6, %c0_7, %c0_8, %c0_9], %15 {strides = array<i32>} : memref<1x8x16x128xf32, #tpu.memory_space<vmem>>, vector<1x8x16x128xf32>,
    return
  }
  func.func @transform_0(%arg0: i32, %arg1: i32) -> (i32, i32, i32) {
    %c0_i32 = arith.constant 0 : i32
    %c0_i32_0 = arith.constant 0 : i32
    return %arg0, %arg1, %c0_i32 : i32, i32, i32
  }
  func.func @transform_1(%arg0: i32, %arg1: i32) -> (i32, i32) {
    %c0_i32 = arith.constant 0 : i32
    %c0_i32_0 = arith.constant 0 : i32
    %c0_i32_1 = arith.constant 0 : i32
    return %c0_i32, %c0_i32_0 : i32, i32
  }
  func.func @transform_2(%arg0: i32, %arg1: i32) -> (i32, i32) {
    %c0_i32 = arith.constant 0 : i32
    %c0_i32_0 = arith.constant 0 : i32
    %c0_i32_1 = arith.constant 0 : i32
    return %c0_i32, %c0_i32_0 : i32, i32
  }
  func.func @transform_3(%arg0: i32, %arg1: i32) -> (i32, i32, i32, i32) {
    %c0_i32 = arith.constant 0 : i32
    %c0_i32_0 = arith.constant 0 : i32
    %c0_i32_1 = arith.constant 0 : i32
    return %arg0, %arg1, %c0_i32, %c0_i32_0 : i32, i32, i32, i32
  }
}

</mosaic_0001>

<bundles_post_ra>
// kernel: adap_conv_fwd.3
= control target key start
LH: loop header
LB: loop body
LE: loop exit
PB: predicated region body
PF: predicated region fallthrough
CT: control target
= control target key end

     0   :  { %s567_s12 = smov 0   ;;  %s569_s13 = smov 0   ;;  %s692_s0 = inlined_call_operand.vmem [shape: bf16[2,512,128], index: 0, kind: input, shape index: {}]   ;;  %s693_s1 = inlined_call_operand.vmem [shape: f32[1,128], index: 1, kind: input, shape index: {}]   ;;  %s694_s2 = inlined_call_operand.vmem [shape: f32[1,128], index: 2, kind: input, shape index: {}]   ;;  %s695_s3 = inlined_call_operand.vmem [shape: f32[2,16,16,128], index: 3, kind: output, shape index: {}]  }
   0x1   :  { %s571_s14 = smov 0   ;;  %s573_s15 = smov 0  }
   0x2   :  { %s575_s16 = smov 0  }
   0x3 LB: > { %s22_s17 = sadd.s32 1, %s537_s14  ;;  %s25_s18 = sadd.s32 1, %s541_s15  ;;  %s545_s16 = sphi %s575_s16, %s13_s16   ;;  %s541_s15 = sphi %s573_s15, %s699_s15   ;;  %s537_s14 = sphi %s571_s14, %s698_s14   ;;  %s533_s13 = sphi %s569_s13, %s697_s13   ;;  %s529_s12 = sphi %s567_s12, %s696_s12  }
   0x4   : > { %p23_p0 = scmp.ge.s32.totalorder %s22_s17, 2  ;;  %p416_p1 = scmp.ge.s32.totalorder %s545_s16, 1 }
   0x5   : > { %p158_p2 = scmp.lt.s32.totalorder %s545_s16, 5 }
   0x6   : > { %s701_s17 = smov (%p23_p0, %s22_s17), 0  ;;  %s703_s18 = smov (!%p23_p0, %s25_s18), %s541_s15 }
   0x7   : > { %p159_p3 = pnand %p416_p1, %p158_p2  ;;  %p27_p4 = scmp.ge.s32.totalorder %s703_s18, 2 }
   0x8   : > { %s417_s19 = sshll.u32 (!%p159_p3), %s529_s12, 5  ;;  %p192_p5 = scmp.lt.s32.totalorder (!%p159_p3), %s533_s13, 1 }
   0x9   : > { %s705_s18 = smov (%p27_p4, %s703_s18), 0  ;;  %162 = sbr.rel (%p159_p3) target bundleno = 44 (0x2c), region = 32 }
   0xa   : > { %p194_p6 = scmp.lt.s32.totalorder (!%p159_p3), %s417_s19, 63  ;;  %s420_s20 = sshll.u32 (!%p159_p3), %s529_s12, 3 }
   0xb   : > { %p204_p7 = scmp.lt.s32.totalorder (!%p159_p3), %s420_s20, 15 }
   0xe   : > { %s707_s13 = smov (!%p192_p5, %s533_s13), 1  ;;  %s709_s19 = smov (!%p194_p6, %s417_s19), 63  ;;  %v609_v0 = vld [vmem:[%s693_s1] ss:$0 sm:$0xff] }
   0xf   : > { %s418_s21 = sshll.u32 %s707_s13, 6  ;;  %s422_s27 = sshll.u32 %s707_s13, 5  ;;  %v617_v5 = vld [vmem:[%s694_s2] ss:$0 sm:$0xff] }
  0x10   : > { %s197_s22 = sadd.s32 %s418_s21, %s709_s19  ;;  %s711_s20 = smov (!%p204_p7, %s420_s20), 15 }
  0x11   : > { %s419_s23 = sshll.u32 %s197_s22, 2  ;;  %s421_s5 = sshll.u32 %s711_s20, 1 }
  0x12   : > { %s604_s26 = scalar_lea.vmem %s692_s0, %s419_s23  ;;  %s208_s6 = sadd.s32 %s422_s27, %s421_s5 }
  0x13   : > { %v427_v1 = vld [vmem:[%s604_s26] sm:$0xff]   ;;  %v458_v2 = vld [vmem:[%s604_s26 + $0x10] sm:$0xff]   ;;  %s423_s7 = sshll.u32 %s208_s6, 3 }
  0x14   : > { %v459_v3 = vld [vmem:[%s604_s26 + $0x20] sm:$0xff]   ;;  %v428_v4 = vunpack.c.l.bf16 %v427_v1  ;;  %v429_v6 = vunpack.c.h.bf16 %v427_v1  ;;  %v432_v7 = vunpack.c.l.bf16 %v458_v2  ;;  %v433_v8 = vunpack.c.h.bf16 %v458_v2  ;;  %v460_v9 = vld [vmem:[%s604_s26 + $0x30] sm:$0xff]   ;;  %s635_s10 = scalar_lea.vmem %s695_s3, %s423_s7 }
  0x15   : > { %v436_v10 = vunpack.c.l.bf16 %v459_v3  ;;  %v437_v11 = vunpack.c.h.bf16 %v459_v3  ;;  %v440_v12 = vunpack.c.l.bf16 %v460_v9  ;;  %v441_v13 = vunpack.c.h.bf16 %v460_v9  ;;  %v461_v30 = vld [vmem:[%s604_s26 + $0x40] sm:$0xff]   ;;  %v462_v31 = vld [vmem:[%s604_s26 + $0x50] sm:$0xff]  }
  0x16   : > { %v248_v14 = vmul.f32 %v609_v0, %v428_v4  ;;  %v249_v15 = vmul.f32 %v609_v0, %v429_v6  ;;  %v250_v16 = vmul.f32 %v609_v0, %v432_v7  ;;  %v251_v17 = vmul.f32 %v609_v0, %v433_v8  ;;  %v463_v36 = vld [vmem:[%s604_s26 + $0x60] sm:$0xff]   ;;  %v464_v37 = vld [vmem:[%s604_s26 + $0x70] sm:$0xff]  }
  0x17   : > { %v252_v18 = vmul.f32 %v609_v0, %v436_v10  ;;  %v253_v19 = vmul.f32 %v609_v0, %v437_v11  ;;  %v254_v20 = vmul.f32 %v609_v0, %v440_v12  ;;  %v255_v21 = vmul.f32 %v609_v0, %v441_v13 }
  0x18   : > { %v268_v22 = vadd.f32 %v617_v5, %v248_v14  ;;  %v269_v23 = vadd.f32 %v617_v5, %v249_v15  ;;  %v270_v24 = vadd.f32 %v617_v5, %v250_v16  ;;  %v271_v25 = vadd.f32 %v617_v5, %v251_v17 }
  0x19   : > { %v272_v26 = vadd.f32 %v617_v5, %v252_v18  ;;  %v273_v27 = vadd.f32 %v617_v5, %v253_v19  ;;  %v274_v28 = vadd.f32 %v617_v5, %v254_v20  ;;  %v275_v29 = vadd.f32 %v617_v5, %v255_v21 }
  0x1a   : > { %v284_v32 = vmax.f32 %v268_v22, 0.0  ;;  %v285_v33 = vmax.f32 %v269_v23, 0.0  ;;  %v286_v34 = vmax.f32 %v270_v24, 0.0  ;;  %v287_v35 = vmax.f32 %v271_v25, 0.0 }
  0x1b   : > { %v288_v38 = vmax.f32 %v272_v26, 0.0  ;;  %v289_v39 = vmax.f32 %v273_v27, 0.0  ;;  %v290_v40 = vmax.f32 %v274_v28, 0.0  ;;  %v291_v41 = vmax.f32 %v275_v29, 0.0 }
  0x1c   : > { %300 = vst [vmem:[%s635_s10] sm:$0xff] %v284_v32  ;;  %v444_v42 = vunpack.c.l.bf16 %v461_v30  ;;  %v445_v43 = vunpack.c.h.bf16 %v461_v30  ;;  %v448_v44 = vunpack.c.l.bf16 %v462_v31  ;;  %v449_v45 = vunpack.c.h.bf16 %v462_v31 }
  0x1d   : > { %301 = vst [vmem:[%s635_s10 + $0x8] sm:$0xff] %v285_v33  ;;  %v452_v46 = vunpack.c.l.bf16 %v463_v36  ;;  %v453_v47 = vunpack.c.h.bf16 %v463_v36  ;;  %v456_v48 = vunpack.c.l.bf16 %v464_v37  ;;  %v457_v49 = vunpack.c.h.bf16 %v464_v37 }
  0x1e   : > { %302 = vst [vmem:[%s635_s10 + $0x10] sm:$0xff] %v286_v34  ;;  %v256_v50 = vmul.f32 %v609_v0, %v444_v42  ;;  %v257_v51 = vmul.f32 %v609_v0, %v445_v43  ;;  %v258_v52 = vmul.f32 %v609_v0, %v448_v44  ;;  %v259_v53 = vmul.f32 %v609_v0, %v449_v45 }
  0x1f   : > { %303 = vst [vmem:[%s635_s10 + $0x18] sm:$0xff] %v287_v35  ;;  %v260_v54 = vmul.f32 %v609_v0, %v452_v46  ;;  %v261_v55 = vmul.f32 %v609_v0, %v453_v47  ;;  %v262_v56 = vmul.f32 %v609_v0, %v456_v48  ;;  %v263_v57 = vmul.f32 %v609_v0, %v457_v49 }
  0x20   : > { %304 = vst [vmem:[%s635_s10 + $0x20] sm:$0xff] %v288_v38  ;;  %v276_v58 = vadd.f32 %v617_v5, %v256_v50  ;;  %v277_v59 = vadd.f32 %v617_v5, %v257_v51  ;;  %v278_v60 = vadd.f32 %v617_v5, %v258_v52  ;;  %v279_v61 = vadd.f32 %v617_v5, %v259_v53 }
  0x21   : > { %305 = vst [vmem:[%s635_s10 + $0x28] sm:$0xff] %v289_v39  ;;  %v280_v62 = vadd.f32 %v617_v5, %v260_v54  ;;  %v281_v63 = vadd.f32 %v617_v5, %v261_v55  ;;  %v282_v3 = vadd.f32 %v617_v5, %v262_v56  ;;  %v283_v6 = vadd.f32 %v617_v5, %v263_v57 }
  0x22   : > { %306 = vst [vmem:[%s635_s10 + $0x30] sm:$0xff] %v290_v40  ;;  %v292_v0 = vmax.f32 %v276_v58, 0.0  ;;  %v293_v1 = vmax.f32 %v277_v59, 0.0  ;;  %v294_v2 = vmax.f32 %v278_v60, 0.0  ;;  %v295_v4 = vmax.f32 %v279_v61, 0.0 }
  0x23   : > { %307 = vst [vmem:[%s635_s10 + $0x38] sm:$0xff] %v291_v41  ;;  %v296_v7 = vmax.f32 %v280_v62, 0.0  ;;  %v297_v8 = vmax.f32 %v281_v63, 0.0  ;;  %v298_v9 = vmax.f32 %v282_v3, 0.0  ;;  %v299_v10 = vmax.f32 %v283_v6, 0.0 }
  0x24   : > { %308 = vst [vmem:[%s635_s10 + $0x40] sm:$0xff] %v292_v0 }
  0x25   : > { %309 = vst [vmem:[%s635_s10 + $0x48] sm:$0xff] %v293_v1 }
  0x26   : > { %310 = vst [vmem:[%s635_s10 + $0x50] sm:$0xff] %v294_v2 }
  0x27   : > { %311 = vst [vmem:[%s635_s10 + $0x58] sm:$0xff] %v295_v4 }
  0x28   : > { %312 = vst [vmem:[%s635_s10 + $0x60] sm:$0xff] %v296_v7 }
  0x29   : > { %313 = vst [vmem:[%s635_s10 + $0x68] sm:$0xff] %v297_v8 }
  0x2a   : > { %314 = vst [vmem:[%s635_s10 + $0x70] sm:$0xff] %v298_v9 }
  0x2b   : > { %315 = vst [vmem:[%s635_s10 + $0x78] sm:$0xff] %v299_v10 }
  0x2c PF: > { %s13_s16 = sadd.s32 1, %s545_s16   ;;  %s696_s12 = smov %s537_s14 }
  0x2d   : > { %p10_p8 = scmp.ge.s32.totalorder %s13_s16, 6   ;;  %s697_s13 = smov %s541_s15 }
  0x2e   : > { %s698_s14 = smov %s701_s17  ;;  %s699_s15 = smov %s705_s18 }
  0x2f   :  { %12 = sbr.rel (!%p10_p8) target bundleno = 3 (0x3), region = 62 }

// kernel: adap_conv_fwd.2
= control target key start
LH: loop header
LB: loop body
LE: loop exit
PB: predicated region body
PF: predicated region fallthrough
CT: control target
= control target key end

     0   :  { %s1872_s15 = smov 0   ;;  %s1874_s16 = smov 0   ;;  %s2341_s0 = inlined_call_operand.vmem [shape: bf16[2,512,12], index: 0, kind: input, shape index: {}]   ;;  %s2342_s1 = inlined_call_operand.vmem [shape: bf16[3,12,128], index: 1, kind: input, shape index: {}]   ;;  %s2343_s2 = inlined_call_operand.vmem [shape: bf16[2,512,128], index: 2, kind: output, shape index: {0}]   ;;  %s2344_s3 = inlined_call_operand.vmem [shape: f32[2,1,128], index: 3, kind: output, shape index: {1}]   ;;  %s2345_s4 = inlined_call_operand.vmem [shape: f32[2,1,128], index: 4, kind: output, shape index: {2}]  }
   0x1   :  { %s1876_s17 = smov 0   ;;  %s1878_s18 = smov 0  }
   0x2   :  { %s1880_s19 = smov 0  }
   0x3 LB: > { %s27_s20 = sadd.s32 1, %s1836_s17  ;;  %s34_s21 = sadd.s32 1, %s1840_s18  ;;  %s1844_s19 = sphi %s1880_s19, %s15_s19   ;;  %s1840_s18 = sphi %s1878_s18, %s2349_s18   ;;  %s1836_s17 = sphi %s1876_s17, %s2348_s17   ;;  %s1832_s16 = sphi %s1874_s16, %s2347_s16   ;;  %s1828_s15 = sphi %s1872_s15, %s2346_s15  }
   0x4   : > { %p28_p0 = scmp.ge.s32.totalorder %s27_s20, 2  ;;  %p1510_p1 = scmp.ge.s32.totalorder %s1844_s19, 1 }
   0x5   : > { %p210_p2 = scmp.lt.s32.totalorder %s1844_s19, 5 }
   0x6   : > { %s2351_s20 = smov (%p28_p0, %s27_s20), 0  ;;  %s2353_s21 = smov (!%p28_p0, %s34_s21), %s1840_s18 }
   0x7   : > { %p211_p3 = pnand %p1510_p1, %p210_p2  ;;  %p36_p4 = scmp.ge.s32.totalorder %s2353_s21, 2 }
   0x8   : > { %s1511_s26 = sshll.u32 (!%p211_p3), %s1828_s15, 5  ;;  %p264_p5 = scmp.lt.s32.totalorder (!%p211_p3), %s1832_s16, 1 }
   0x9   : > { %s2355_s21 = smov (%p36_p4, %s2353_s21), 0  ;;  %214 = sbr.rel (%p211_p3) target bundleno = 369 (0x171), region = 28 }
   0xa   : > { %p266_p6 = scmp.lt.s32.totalorder (!%p211_p3), %s1511_s26, 63  ;;  %p1645_p7 = scmp.ne.s32.totalorder (!%p211_p3), %s1828_s15, 0 }
   0xe   : > { %v1605_v0 = vld [vmem:[%s2342_s1] sm:$0xf]  ;;  %v1664_v1 = vld [vmem:[%s2342_s1] sm:$0x30]  ;;  %vm509_vm0 = vcmask 1045504   ;;  %s2357_s16 = smov (!%p264_p5, %s1832_s16), 1  ;;  %v401_v10 = vlaneseq }
   0xf   : > { %v1606_v2 = vor.u32 %v1664_v1, %v1605_v0  ;;  %v1521_v3 = vld [vmem:[%s2342_s1 + $0x8] sm:$0xf]  ;;  %v1665_v4 = vld [vmem:[%s2342_s1 + $0x8] sm:$0x30]  ;;  %v1627_v5 = vld [vmem:[%s2342_s1 + $0x10] sm:$0xf]  ;;  %s1927_s12 = scalar_lea.vmem %s2344_s3, %s2357_s16  ;;  %s1936_s23 = scalar_lea.vmem %s2345_s4, %s2357_s16 }
  0x10   : > { %v1666_v6 = vld [vmem:[%s2342_s1 + $0x10] sm:$0x30]  ;;  %v1522_v8 = vor.u32 %v1665_v4, %v1521_v3  ;;  %s2359_s26 = smov (!%p266_p6, %s1511_s26), 63  ;;  %s1512_s9 = sshll.u32 %s2357_s16, 6  ;;  %v1939_v13 = vshrl.u32 %v401_v10, 7  ;;  %vm460_vm1 = vcmask 97280  }
  0x11   : > { %v736_v7 = vsel %vm509_vm0, %v1606_v2, 0  ;;  %v1628_v9 = vor.u32 %v1666_v6, %v1627_v5  ;;  %s1931_s13 = sadd.s32 %s1512_s9, %s2359_s26 }
  0x12   : > { %745 = vmatpush.bf16.msra.mxu1 %v736_v7  ;;  %v511_v11 = vsel %vm509_vm0, %v1522_v8, 0  ;;  %s1513_s24 = sshll.u32 %s1931_s13, 2  ;;  %vm403_vm2 = vcmp.lt.s32.totalorder %v1939_v13, 7  ;;  %vm859_vm3 = vcmp.lt.s32.totalorder %v1939_v13, 6 }
  0x13   : > { %v965_v12 = vsel %vm509_vm0, %v1628_v9, 0  ;;  %520 = vmatpush.bf16.msra.mxu0 %v511_v11  ;;  %1762 = vmatpush.bf16.msra.mxu3 %v511_v11  ;;  %s1946_s26 = scalar_lea.vmem %s2341_s0, %s1513_s24  ;;  %s2192_s29 = scalar_lea.vmem %s2343_s2, %s1513_s24 }
  0x14   : > { %974 = vmatpush.bf16.msra.mxu2 %v965_v12  ;;  %v1648_v14 = vld [vmem:[%s1946_s26] sm:$0xff]  ;;  %v305_v16 = vld [vmem:[%s1946_s26 + $0x8] sm:$0xff]   ;;  %v307_v38 = vld [vmem:[%s1946_s26 + $0x10] sm:$0xff]  }
  0x15   : > { %v303_v15 = vld [vmem:[%s1946_s26] sm:$0xff]   ;;  %v339_v19 = vunpack.c.l.bf16 %v305_v16  ;;  %v1955_v21 = vld [vmem:[%s1946_s26 + $0x68] sm:$0xff]   ;;  %1607 = vmatmul.msk.bf16.vlgmr.msra.gmra.mxu1 %vm460_vm1, %v1648_v14  ;;  %v1987_v41 = vld [vmem:[%s1946_s26 + $0x70] sm:$0xff]   ;;  %v340_v44 = vunpack.c.h.bf16 %v305_v16  ;;  %v341_v45 = vunpack.c.l.bf16 %v307_v38  ;;  %v342_v3 = vunpack.c.h.bf16 %v307_v38 }
  0x16   : > { %v337_v17 = vunpack.c.l.bf16 %v303_v15  ;;  %v338_v18 = vunpack.c.h.bf16 %v303_v15  ;;  %v1952_v20 = vld [vmem:[%s1946_s26 + $0x60] sm:$0xff]   ;;  %v363_v24 = vunpack.c.l.bf16 %v1955_v21  ;;  %v364_v47 = vunpack.c.h.bf16 %v1955_v21  ;;  %v1649_v51 = vld [vmem:[%s1946_s26 + $0x8] sm:$0xff]  ;;  %v309_v0 = vld [vmem:[%s1946_s26 + $0x18] sm:$0xff]  }
  0x17   : > { %1763 = vmatpush.bf16.msrb.mxu3 %v736_v7  ;;  %v361_v22 = vunpack.c.l.bf16 %v1952_v20  ;;  %v362_v23 = vunpack.c.h.bf16 %v1952_v20  ;;  %v371_v27 = vrot.slane %v339_v19, 1  ;;  %v829_v40 = vrot.slane %v339_v19, 2  ;;  %v2019_v1 = vld [vmem:[%s1946_s26 + $0x78] sm:$0xff]   ;;  %v1650_v9 = vld [vmem:[%s1946_s26 + $0x10] sm:$0xff] }
  0x18   : > { %v1962_v25 = vrot.slane %v337_v17, 1  ;;  %v370_v26 = vrot.slane %v338_v18, 1  ;;  %v395_v30 = vrot.slane %v363_v24, 1  ;;  %v1972_v31 = vrot.slane %v337_v17, 2  ;;  %v1651_v38 = vld [vmem:[%s1946_s26 + $0x18] sm:$0xff] }
  0x19   : > { %v1966_v28 = vrot.slane %v361_v22, 1  ;;  %v394_v29 = vrot.slane %v362_v23, 1  ;;  %v828_v37 = vrot.slane %v338_v18, 2  ;;  %v365_v48 = vunpack.c.l.bf16 %v1987_v41 }
  0x1a   : > { %v433_v32 = vsel %vm403_vm2, %v370_v26, %v371_v27  ;;  %v434_v33 = vsel %vm403_vm2, %v1962_v25, %v370_v26  ;;  %v372_v49 = vrot.slane %v340_v44, 1  ;;  %v373_v50 = vrot.slane %v341_v45, 1 }
  0x1b   : > { %v436_v34 = vpack.c.bf16 %v433_v32, %v434_v33  ;;  %v409_v35 = vsel %vm403_vm2, %v394_v29, %v395_v30  ;;  %v410_v36 = vsel %vm403_vm2, %v1966_v28, %v394_v29  ;;  %v890_v42 = vsel %vm859_vm3, %v1972_v31, %v828_v37 }
  0x1c   : > { %v448_v39 = vpack.c.bf16 %v409_v35, %v410_v36  ;;  %v889_v43 = vsel %vm859_vm3, %v828_v37, %v829_v40  ;;  %v396_v52 = vrot.slane %v364_v47, 1  ;;  %v397_v53 = vrot.slane %v365_v48, 1 }
  0x1d   : > { %1523 = vmatmul.msk.bf16.vlgmr.msra.gmra.mxu0 %vm460_vm1, %v436_v34  ;;  %v892_v46 = vpack.c.bf16 %v889_v43, %v890_v42  ;;  %v431_v54 = vsel %vm403_vm2, %v372_v49, %v373_v50  ;;  %v432_v55 = vsel %vm403_vm2, %v371_v27, %v372_v49  ;;  %v830_v56 = vrot.slane %v340_v44, 2 }
  0x1e   : > { %1535 = vmatmul.msk.bf16.vlgmr.msra.gmra.mxu3 %vm460_vm1, %v448_v39  ;;  %v831_v57 = vrot.slane %v341_v45, 2  ;;  %v407_v58 = vsel %vm403_vm2, %v396_v52, %v397_v53  ;;  %v408_v59 = vsel %vm403_vm2, %v395_v30, %v396_v52  ;;  %v437_v60 = vpack.c.bf16 %v431_v54, %v432_v55  ;;  %v311_v30 = vld [vmem:[%s1946_s26 + $0x20] sm:$0xff]  }
  0x1f   : > { %1764 = vmatpush.bf16.msra.mxu3 %v965_v12  ;;  %1629 = vmatmul.msk.bf16.vlgmr.msra.gmra.mxu2 %vm460_vm1, %v892_v46  ;;  %v449_v61 = vpack.c.bf16 %v407_v58, %v408_v59  ;;  %v888_v63 = vsel %vm859_vm3, %v829_v40, %v830_v56  ;;  %v343_v4 = vunpack.c.l.bf16 %v309_v0  ;;  %v366_v5 = vunpack.c.h.bf16 %v1987_v41  ;;  %v1652_v58 = vld [vmem:[%s1946_s26 + $0x20] sm:$0xff] }
  0x20   : > { %v887_v62 = vsel %vm859_vm3, %v830_v56, %v831_v57  ;;  %v367_v6 = vunpack.c.l.bf16 %v2019_v1  ;;  %v374_v7 = vrot.slane %v342_v3, 1  ;;  %v832_v15 = vrot.slane %v342_v3, 2 }
  0x21   : > { %v893_v2 = vpack.c.bf16 %v887_v62, %v888_v63  ;;  %v375_v8 = vrot.slane %v343_v4, 1  ;;  %v398_v10 = vrot.slane %v366_v5, 1  ;;  %v833_v16 = vrot.slane %v343_v4, 2  ;;  %v315_v4 = vld [vmem:[%s1946_s26 + $0x30] sm:$0xff]  }
  0x22   : > { %v399_v11 = vrot.slane %v367_v6, 1  ;;  %v430_v14 = vsel %vm403_vm2, %v373_v50, %v374_v7  ;;  %v886_v29 = vsel %vm859_vm3, %v831_v57, %v832_v15  ;;  %v344_v33 = vunpack.c.h.bf16 %v309_v0  ;;  %v1660_v0 = vld [vmem:[%s1946_s26 + $0x60] sm:$0xff] }
  0x23   : > { %v429_v12 = vsel %vm403_vm2, %v374_v7, %v375_v8  ;;  %v406_v18 = vsel %vm403_vm2, %v397_v53, %v398_v10  ;;  %v885_v27 = vsel %vm859_vm3, %v832_v15, %v833_v16  ;;  %v345_v34 = vunpack.c.l.bf16 %v311_v30  ;;  %v313_v53 = vld [vmem:[%s1946_s26 + $0x28] sm:$0xff]  }
  0x24   : > { %v405_v17 = vsel %vm403_vm2, %v398_v10, %v399_v11  ;;  %v438_v19 = vpack.c.bf16 %v429_v12, %v430_v14  ;;  %v894_v32 = vpack.c.bf16 %v885_v27, %v886_v29  ;;  %v368_v35 = vunpack.c.h.bf16 %v2019_v1  ;;  %v1653_v12 = vld [vmem:[%s1946_s26 + $0x28] sm:$0xff]  ;;  %v317_v29 = vld [vmem:[%s1946_s26 + $0x38] sm:$0xff]  }
  0x25   : > { %1608 = vmatmul.msk.bf16.gmra.mxu1 %vm460_vm1, %v1649_v51  ;;  %v450_v26 = vpack.c.bf16 %v405_v17, %v406_v18  ;;  %v376_v36 = vrot.slane %v344_v33, 1  ;;  %v377_v37 = vrot.slane %v345_v34, 1  ;;  %v834_v43 = vrot.slane %v344_v33, 2 }
  0x26   : > { %v400_v39 = vrot.slane %v368_v35, 1  ;;  %v835_v44 = vrot.slane %v345_v34, 2  ;;  %v346_v55 = vunpack.c.h.bf16 %v311_v30  ;;  %v347_v56 = vunpack.c.l.bf16 %v313_v53 }
  0x27   : > { %v427_v40 = vsel %vm403_vm2, %v376_v36, %v377_v37  ;;  %v428_v42 = vsel %vm403_vm2, %v375_v8, %v376_v36  ;;  %v884_v52 = vsel %vm859_vm3, %v833_v16, %v834_v43  ;;  %v348_v8 = vunpack.c.h.bf16 %v313_v53 }
  0x28   : > { %v404_v45 = vsel %vm403_vm2, %v399_v11, %v400_v39  ;;  %v435_v46 = vsel %vm403_vm2, %v400_v39, %v1962_v25  ;;  %v439_v49 = vpack.c.bf16 %v427_v40, %v428_v42  ;;  %v883_v51 = vsel %vm859_vm3, %v834_v43, %v835_v44 }
  0x29   : > { %v451_v50 = vpack.c.bf16 %v435_v46, %v404_v45  ;;  %v895_v54 = vpack.c.bf16 %v883_v51, %v884_v52  ;;  %v378_v25 = vrot.slane %v346_v55, 1  ;;  %v379_v57 = vrot.slane %v347_v56, 1  ;;  %v319_v52 = vld [vmem:[%s1946_s26 + $0x40] sm:$0xff]  }
  0x2a   : > { %v837_v62 = vrot.slane %v347_v56, 2  ;;  %v380_v10 = vrot.slane %v348_v8, 1  ;;  %v838_v16 = vrot.slane %v348_v8, 2  ;;  %v351_v33 = vunpack.c.l.bf16 %v317_v29 }
  0x2b   : > { %v425_v59 = vsel %vm403_vm2, %v378_v25, %v379_v57  ;;  %v2119_v51 = vrot.slane %v363_v24, 2 }
  0x2c   : > { %v424_v15 = vsel %vm403_vm2, %v379_v57, %v380_v10  ;;  %v880_v27 = vsel %vm859_vm3, %v837_v62, %v838_v16  ;;  %v383_v36 = vrot.slane %v351_v33, 1  ;;  %v841_v42 = vrot.slane %v351_v33, 2 }
  0x2d   : > { %1524 = vmatmul.msk.bf16.gmra.mxu0 %vm460_vm1, %v437_v60  ;;  %v426_v60 = vsel %vm403_vm2, %v377_v37, %v378_v25  ;;  %v1654_v37 = vld [vmem:[%s1946_s26 + $0x30] sm:$0xff]  ;;  %v1655_v25 = vld [vmem:[%s1946_s26 + $0x38] sm:$0xff] }
  0x2e   : > { %1536 = vmatmul.msk.bf16.gmra.mxu3 %vm460_vm1, %v449_v61  ;;  %v836_v61 = vrot.slane %v346_v55, 2  ;;  %v440_v63 = vpack.c.bf16 %v425_v59, %v426_v60  ;;  %v353_v55 = vunpack.c.l.bf16 %v319_v52 }
  0x2f   : > { %1630 = vmatmul.msk.bf16.gmra.mxu2 %vm460_vm1, %v893_v2 }
  0x30   : > { %v881_v2 = vsel %vm859_vm3, %v836_v61, %v837_v62  ;;  %v882_v3 = vsel %vm859_vm3, %v835_v44, %v836_v61  ;;  %v1662_v44 = vld [vmem:[%s1946_s26 + $0x70] sm:$0xff]  ;;  %v385_v56 = vrot.slane %v353_v55, 1  ;;  %v843_v60 = vrot.slane %v353_v55, 2  ;;  %v1663_v62 = vld [vmem:[%s1946_s26 + $0x78] sm:$0xff] }
  0x31   : > { %v896_v7 = vpack.c.bf16 %v881_v2, %v882_v3  ;;  %v321_v2 = vld [vmem:[%s1946_s26 + $0x48] sm:$0xff]  }
  0x35   : > { %1609 = vmatmul.msk.bf16.gmra.mxu1 %vm460_vm1, %v1650_v9  ;;  %v349_v9 = vunpack.c.l.bf16 %v315_v4 }
  0x37   : > { %v381_v11 = vrot.slane %v349_v9, 1  ;;  %v839_v17 = vrot.slane %v349_v9, 2 }
  0x39   : > { %v423_v14 = vsel %vm403_vm2, %v380_v10, %v381_v11  ;;  %v1656_v10 = vld [vmem:[%s1946_s26 + $0x40] sm:$0xff] }
  0x3a   : > { %v441_v18 = vpack.c.bf16 %v423_v14, %v424_v15 }
  0x3d   : > { %1525 = vmatmul.msk.bf16.gmra.mxu0 %vm460_vm1, %v438_v19  ;;  %v1661_v19 = vld [vmem:[%s1946_s26 + $0x68] sm:$0xff] }
  0x3e   : > { %1537 = vmatmul.msk.bf16.gmra.mxu3 %vm460_vm1, %v450_v26  ;;  %v879_v26 = vsel %vm859_vm3, %v838_v16, %v839_v17 }
  0x3f   : > { %1631 = vmatmul.msk.bf16.gmra.mxu2 %vm460_vm1, %v894_v32  ;;  %v897_v30 = vpack.c.bf16 %v879_v26, %v880_v27  ;;  %v350_v32 = vunpack.c.h.bf16 %v315_v4  ;;  %v354_v4 = vunpack.c.h.bf16 %v319_v52  ;;  %v323_v27 = vld [vmem:[%s1946_s26 + $0x50] sm:$0xff]  }
  0x40   : > { %v357_v33 = vunpack.c.l.bf16 %v323_v27 }
  0x41   : > { %v382_v34 = vrot.slane %v350_v32, 1  ;;  %v840_v40 = vrot.slane %v350_v32, 2  ;;  %v386_v8 = vrot.slane %v354_v4, 1  ;;  %v844_v15 = vrot.slane %v354_v4, 2 }
  0x42   : > { %v356_v32 = vunpack.c.h.bf16 %v321_v2  ;;  %v847_v52 = vrot.slane %v357_v33, 2 }
  0x43   : > { %v422_v39 = vsel %vm403_vm2, %v381_v11, %v382_v34  ;;  %v877_v45 = vsel %vm859_vm3, %v840_v40, %v841_v42  ;;  %v878_v46 = vsel %vm859_vm3, %v839_v17, %v840_v40  ;;  %v418_v14 = vsel %vm403_vm2, %v385_v56, %v386_v8 }
  0x44   : > { %v898_v53 = vpack.c.bf16 %v877_v45, %v878_v46  ;;  %v874_v26 = vsel %vm859_vm3, %v843_v60, %v844_v15  ;;  %v854_v40 = vrot.slane %v364_v47, 2 }
  0x45   : > { %1610 = vmatmul.msk.bf16.gmra.mxu1 %vm460_vm1, %v1651_v38  ;;  %v421_v38 = vsel %vm403_vm2, %v382_v34, %v383_v36 }
  0x46   : > { %v442_v43 = vpack.c.bf16 %v421_v38, %v422_v39  ;;  %v389_v38 = vrot.slane %v357_v33, 1  ;;  %v1657_v39 = vld [vmem:[%s1946_s26 + $0x48] sm:$0xff]  ;;  %v864_v47 = vsel %vm859_vm3, %v2119_v51, %v854_v40 }
  0x4d   : > { %1526 = vmatmul.msk.bf16.gmra.mxu0 %vm460_vm1, %v439_v49  ;;  %v2113_v49 = vrot.slane %v361_v22, 2 }
  0x4e   : > { %1538 = vmatmul.msk.bf16.gmra.mxu3 %vm460_vm1, %v451_v50  ;;  %v852_v50 = vrot.slane %v362_v23, 2 }
  0x4f   : > { %1632 = vmatmul.msk.bf16.gmra.mxu2 %vm460_vm1, %v895_v54  ;;  %v352_v54 = vunpack.c.h.bf16 %v317_v29 }
  0x50   : > { %v865_v22 = vsel %vm859_vm3, %v852_v50, %v2119_v51  ;;  %v866_v20 = vsel %vm859_vm3, %v2113_v49, %v852_v50  ;;  %v846_v50 = vrot.slane %v356_v32, 2 }
  0x51   : > { %v904_v23 = vpack.c.bf16 %v865_v22, %v866_v20  ;;  %v384_v24 = vrot.slane %v352_v54, 1  ;;  %v842_v59 = vrot.slane %v352_v54, 2 }
  0x52   : > { %v871_v22 = vsel %vm859_vm3, %v846_v50, %v847_v52 }
  0x53   : > { %v419_v57 = vsel %vm403_vm2, %v384_v24, %v385_v56 }
  0x55   : > { %1611 = vmatmul.msk.bf16.gmra.mxu1 %vm460_vm1, %v1652_v58  ;;  %v420_v58 = vsel %vm403_vm2, %v383_v36, %v384_v24 }
  0x56   : > { %v443_v61 = vpack.c.bf16 %v419_v57, %v420_v58 }
  0x5d   : > { %1527 = vmatmul.msk.bf16.gmra.mxu0 %vm460_vm1, %v440_v63  ;;  %v875_v63 = vsel %vm859_vm3, %v842_v59, %v843_v60  ;;  %v358_v60 = vunpack.c.h.bf16 %v323_v27 }
  0x5e   : > { %1619 = vmatmul.msk.bf16.vlgmr.msrb.gmra.mxu3 %vm460_vm1, %v1660_v0  ;;  %v876_v0 = vsel %vm859_vm3, %v841_v42, %v842_v59  ;;  %v855_v42 = vrot.slane %v365_v48, 2 }
  0x5f   : > { %1633 = vmatmul.msk.bf16.gmra.mxu2 %vm460_vm1, %v896_v7  ;;  %v899_v3 = vpack.c.bf16 %v875_v63, %v876_v0  ;;  %v355_v7 = vunpack.c.l.bf16 %v321_v2 }
  0x60   : > { %v863_v21 = vsel %vm859_vm3, %v854_v40, %v855_v42 }
  0x61   : > { %v387_v9 = vrot.slane %v355_v7, 1  ;;  %v845_v16 = vrot.slane %v355_v7, 2 }
  0x63   : > { %v872_v20 = vsel %vm859_vm3, %v845_v16, %v846_v50 }
  0x64   : > { %v901_v51 = vpack.c.bf16 %v871_v22, %v872_v20 }
  0x65   : > { %1612 = vmatmul.msk.bf16.gmra.mxu1 %vm460_vm1, %v1653_v12  ;;  %v417_v12 = vsel %vm403_vm2, %v386_v8, %v387_v9  ;;  %v390_v8 = vrot.slane %v358_v60, 1 }
  0x66   : > { %v444_v17 = vpack.c.bf16 %v417_v12, %v418_v14  ;;  %v857_v12 = vrot.slane %v367_v6, 2 }
  0x6d   : > { %1528 = vmatmul.msk.bf16.gmra.mxu0 %vm460_vm1, %v441_v18 }
  0x6e   : > { %1620 = vmatmul.msk.bf16.gmra.mxu3 %vm460_vm1, %v1661_v19  ;;  %v873_v19 = vsel %vm859_vm3, %v844_v15, %v845_v16 }
  0x6f   : > { %1634 = vmatmul.msk.bf16.gmra.mxu2 %vm460_vm1, %v897_v30  ;;  %v900_v30 = vpack.c.bf16 %v873_v19, %v874_v26 }
  0x75   : > { %1613 = vmatmul.msk.bf16.gmra.mxu1 %vm460_vm1, %v1654_v37  ;;  %v388_v37 = vrot.slane %v356_v32, 1 }
  0x77   : > { %v415_v45 = vsel %vm403_vm2, %v388_v37, %v389_v38  ;;  %v416_v46 = vsel %vm403_vm2, %v387_v9, %v388_v37 }
  0x78   : > { %v445_v54 = vpack.c.bf16 %v415_v45, %v416_v46 }
  0x7d   : > { %1529 = vmatmul.msk.bf16.gmra.mxu0 %vm460_vm1, %v442_v43 }
  0x7e   : > { %1621 = vmatmul.msk.bf16.gmra.mxu3 %vm460_vm1, %v1662_v44 }
  0x7f   : > { %1635 = vmatmul.msk.bf16.gmra.mxu2 %vm460_vm1, %v898_v53 }
  0x85   : > { %1614 = vmatmul.msk.bf16.gmra.mxu1 %vm460_vm1, %v1655_v25  ;;  %v2184_v25 = vld [vmem:[%s1946_s26 + $0x58] sm:$0xff]  }
  0x8d   : > { %1530 = vmatmul.msk.bf16.gmra.mxu0 %vm460_vm1, %v443_v61  ;;  %v359_v61 = vunpack.c.l.bf16 %v2184_v25 }
  0x8e   : > { %1622 = vmatmul.msk.bf16.gmra.mxu3 %vm460_vm1, %v1663_v62 }
  0x8f   : > { %1636 = vmatmul.msk.bf16.gmra.mxu2 %vm460_vm1, %v899_v3  ;;  %v391_v9 = vrot.slane %v359_v61, 1  ;;  %v849_v19 = vrot.slane %v359_v61, 2 }
  0x91   : > { %v413_v16 = vsel %vm403_vm2, %v390_v8, %v391_v9 }
  0x92   : > { %v747_v11 = vpop.f32.mrf.mxu1 }
  0x95   : > { %1615 = vmatmul.msk.bf16.gmra.mxu1 %vm460_vm1, %v1656_v10  ;;  %v1658_v10 = vld [vmem:[%s1946_s26 + $0x50] sm:$0xff] }
  0x9a   : > { %v522_v18 = vpop.f32.mrf.mxu0  ;;  %v749_v29 = vpop.f32.mrf.mxu1 }
  0x9b   : > { %v748_v53 = vadd.f32 %v747_v11, %v522_v18  ;;  %v856_v11 = vrot.slane %v366_v5, 2  ;;  %v848_v18 = vrot.slane %v358_v60, 2 }
  0x9d   : > { %1531 = vmatmul.msk.bf16.gmra.mxu0 %vm460_vm1, %v444_v17  ;;  %v414_v17 = vsel %vm403_vm2, %v389_v38, %v390_v8  ;;  %v861_v26 = vsel %vm859_vm3, %v856_v11, %v857_v12  ;;  %v862_v41 = vsel %vm859_vm3, %v855_v42, %v856_v11  ;;  %v870_v32 = vsel %vm859_vm3, %v847_v52, %v848_v18 }
  0x9e   : > { %1641 = vmatmul.msk.bf16.vlgmr.msra.gmra.mxu3 %vm460_vm1, %v904_v23  ;;  %v905_v23 = vpack.c.bf16 %v863_v21, %v864_v47  ;;  %v446_v27 = vpack.c.bf16 %v413_v16, %v414_v17  ;;  %v906_v33 = vpack.c.bf16 %v861_v26, %v862_v41  ;;  %v858_v21 = vrot.slane %v368_v35, 2 }
  0x9f   : > { %1637 = vmatmul.msk.bf16.gmra.mxu2 %vm460_vm1, %v900_v30  ;;  %v869_v30 = vsel %vm859_vm3, %v848_v18, %v849_v19 }
  0xa0   : > { %v902_v42 = vpack.c.bf16 %v869_v30, %v870_v32  ;;  %v891_v1 = vsel %vm859_vm3, %v858_v21, %v1972_v31 }
  0xa1   : > { %v2160_v34 = vpop.f32.mrf.mxu3 }
  0xa2   : > { %v524_v36 = vpop.f32.mrf.mxu0  ;;  %v976_v43 = vpop.f32.mrf.mxu2 }
  0xa3   : > { %v752_v44 = vpop.f32.mrf.mxu1  ;;  %v1056_v24 = vadd.f32 %v976_v43, %v748_v53  ;;  %v750_v56 = vadd.f32 %v749_v29, %v524_v36  ;;  %v360_v43 = vunpack.c.h.bf16 %v2184_v25  ;;  %v1659_v53 = vld [vmem:[%s1946_s26 + $0x58] sm:$0xff]  ;;  %v860_v25 = vsel %vm859_vm3, %v857_v12, %v858_v21 }
  0xa4   : > { %v907_v60 = vpack.c.bf16 %v891_v1, %v860_v25 }
  0xa5   : > { %1616 = vmatmul.msk.bf16.gmra.mxu1 %vm460_vm1, %v1657_v39  ;;  %v1236_v62 = vmul.f32 %v1056_v24, %v1056_v24  ;;  %v392_v52 = vrot.slane %v360_v43, 1 }
  0xa7   : > { %v411_v22 = vsel %vm403_vm2, %v392_v52, %v1966_v28  ;;  %v412_v20 = vsel %vm403_vm2, %v391_v9, %v392_v52 }
  0xa8   : > { %v447_v28 = vpack.c.bf16 %v411_v22, %v412_v20 }
  0xa9   : > { %v2177_v48 = vpop.f32.mrf.mxu3 }
  0xaa   : > { %v527_v55 = vpop.f32.mrf.mxu0  ;;  %v978_v57 = vpop.f32.mrf.mxu2 }
  0xab   : > { %v754_v58 = vpop.f32.mrf.mxu1  ;;  %v1057_v59 = vadd.f32 %v978_v57, %v750_v56  ;;  %v753_v5 = vadd.f32 %v752_v44, %v527_v55 }
  0xad   : > { %1532 = vmatmul.msk.bf16.gmra.mxu0 %vm460_vm1, %v445_v54  ;;  %v1670_v63 = vpack.c.bf16 %v1057_v59, %v1056_v24  ;;  %v1199_v0 = vadd.f32 %v1057_v59, %v1056_v24  ;;  %v1237_v2 = vmul.f32 %v1057_v59, %v1057_v59 }
  0xae   : > { %1642 = vmatmul.msk.bf16.gmra.mxu3 %vm460_vm1, %v905_v23  ;;  %v850_v23 = vrot.slane %v360_v43, 2 }
  0xaf   : > { %1671 = vst [vmem:[%s2192_s29] sm:$0xff] %v1670_v63   ;;  %v1268_v3 = vadd.f32 %v1237_v2, %v1236_v62  ;;  %1638 = vmatmul.msk.bf16.gmra.mxu2 %vm460_vm1, %v901_v51 }
  0xb0   : > { %v867_v59 = vsel %vm859_vm3, %v850_v23, %v2113_v49  ;;  %v868_v51 = vsel %vm859_vm3, %v849_v19, %v850_v23 }
  0xb1   : > { %v2198_v4 = vpop.f32.mrf.mxu3  ;;  %v903_v31 = vpack.c.bf16 %v867_v59, %v868_v51 }
  0xb2   : > { %v529_v7 = vpop.f32.mrf.mxu0  ;;  %v981_v14 = vpop.f32.mrf.mxu2 }
  0xb3   : > { %v757_v15 = vpop.f32.mrf.mxu1  ;;  %v755_v36 = vadd.f32 %v754_v58, %v529_v7  ;;  %v1058_v39 = vadd.f32 %v981_v14, %v753_v5 }
  0xb5   : > { %1617 = vmatmul.msk.bf16.gmra.mxu1 %vm460_vm1, %v1658_v10 }
  0xb9   : > { %v2214_v6 = vpop.f32.mrf.mxu3 }
  0xba   : > { %v532_v29 = vpop.f32.mrf.mxu0  ;;  %v983_v37 = vpop.f32.mrf.mxu2 }
  0xbb   : > { %v759_v38 = vpop.f32.mrf.mxu1  ;;  %v1059_v40 = vadd.f32 %v983_v37, %v755_v36  ;;  %v758_v45 = vadd.f32 %v757_v15, %v532_v29 }
  0xbd   : > { %1533 = vmatmul.msk.bf16.gmra.mxu0 %vm460_vm1, %v446_v27  ;;  %v1675_v44 = vpack.c.bf16 %v1059_v40, %v1058_v39 }
  0xbe   : > { %1643 = vmatmul.msk.bf16.gmra.mxu3 %vm460_vm1, %v906_v33 }
  0xbf   : > { %1747 = vst [vmem:[%s2192_s29 + $0x8] sm:$0xff] %v1675_v44   ;;  %1639 = vmatmul.msk.bf16.gmra.mxu2 %vm460_vm1, %v902_v42 }
  0xc1   : > { %v2225_v46 = vpop.f32.mrf.mxu3 }
  0xc2   : > { %v534_v50 = vpop.f32.mrf.mxu0  ;;  %v986_v47 = vpop.f32.mrf.mxu2 }
  0xc3   : > { %v762_v54 = vpop.f32.mrf.mxu1  ;;  %v1060_v55 = vadd.f32 %v986_v47, %v758_v45  ;;  %v760_v61 = vadd.f32 %v759_v38, %v534_v50 }
  0xc5   : > { %v1202_v24 = vadd.f32 %v1199_v0, %v1060_v55  ;;  %v1240_v56 = vmul.f32 %v1060_v55, %v1060_v55  ;;  %1618 = vmatmul.msk.bf16.gmra.mxu1 %vm460_vm1, %v1659_v53 }
  0xc7   : > { %v1271_v35 = vadd.f32 %v1268_v3, %v1240_v56 }
  0xc9   : > { %v2241_v57 = vpop.f32.mrf.mxu3 }
  0xca   : > { %v537_v58 = vpop.f32.mrf.mxu0  ;;  %v988_v62 = vpop.f32.mrf.mxu2 }
  0xcb   : > { %v764_v63 = vpop.f32.mrf.mxu1  ;;  %v1061_v0 = vadd.f32 %v988_v62, %v760_v61  ;;  %v763_v11 = vadd.f32 %v762_v54, %v537_v58 }
  0xcd   : > { %1534 = vmatmul.msk.bf16.gmra.mxu0 %vm460_vm1, %v447_v28  ;;  %v1680_v2 = vpack.c.bf16 %v1061_v0, %v1060_v55  ;;  %v1203_v3 = vadd.f32 %v1202_v24, %v1061_v0  ;;  %v1241_v7 = vmul.f32 %v1061_v0, %v1061_v0 }
  0xce   : > { %1644 = vmatmul.msk.bf16.gmra.mxu3 %vm460_vm1, %v907_v60 }
  0xcf   : > { %1748 = vst [vmem:[%s2192_s29 + $0x10] sm:$0xff] %v1680_v2   ;;  %v1272_v8 = vadd.f32 %v1271_v35, %v1241_v7  ;;  %1640 = vmatmul.msk.bf16.gmra.mxu2 %vm460_vm1, %v903_v31 }
  0xd1   : > { %v2252_v13 = vpop.f32.mrf.mxu3 }
  0xd2   : > { %v539_v49 = vpop.f32.mrf.mxu0  ;;  %v991_v9 = vpop.f32.mrf.mxu2 }
  0xd3   : > { %v767_v10 = vpop.f32.mrf.mxu1  ;;  %v765_v15 = vadd.f32 %v764_v63, %v539_v49  ;;  %v1062_v18 = vadd.f32 %v991_v9, %v763_v11 }
  0xd9   : > { %v2254_v12 = vpop.f32.mrf.mxu3 }
  0xda   : > { %v542_v14 = vpop.f32.mrf.mxu0  ;;  %v993_v16 = vpop.f32.mrf.mxu2 }
  0xdb   : > { %v769_v17 = vpop.f32.mrf.mxu1  ;;  %v1063_v19 = vadd.f32 %v993_v16, %v765_v15  ;;  %v768_v41 = vadd.f32 %v767_v10, %v542_v14 }
  0xdd   : > { %v1685_v26 = vpack.c.bf16 %v1063_v19, %v1062_v18 }
  0xdf   : > { %1749 = vst [vmem:[%s2192_s29 + $0x18] sm:$0xff] %v1685_v26  }
  0xe1   : > { %v807_v5 = vpop.f32.mrf.mxu3 }
  0xe2   : > { %v2258_v27 = vadd.f32 %v807_v5, %v2160_v34  ;;  %v544_v29 = vpop.f32.mrf.mxu0  ;;  %v996_v30 = vpop.f32.mrf.mxu2 }
  0xe3   : > { %v772_v32 = vpop.f32.mrf.mxu1  ;;  %v1064_v33 = vadd.f32 %v996_v30, %v768_v41  ;;  %v770_v42 = vadd.f32 %v769_v17, %v544_v29 }
  0xe5   : > { %v1206_v36 = vadd.f32 %v1203_v3, %v1064_v33  ;;  %v1244_v37 = vmul.f32 %v1064_v33, %v1064_v33 }
  0xe7   : > { %v1275_v38 = vadd.f32 %v1272_v8, %v1244_v37 }
  0xe9   : > { %v809_v39 = vpop.f32.mrf.mxu3 }
  0xea   : > { %v547_v40 = vpop.f32.mrf.mxu0  ;;  %v998_v43 = vpop.f32.mrf.mxu2 }
  0xeb   : > { %v774_v44 = vpop.f32.mrf.mxu1  ;;  %v1065_v45 = vadd.f32 %v998_v43, %v770_v42  ;;  %v773_v20 = vadd.f32 %v772_v32, %v547_v40 }
  0xed   : > { %v1690_v50 = vpack.c.bf16 %v1065_v45, %v1064_v33  ;;  %v2260_v52 = vadd.f32 %v1206_v36, %v1065_v45  ;;  %v1245_v53 = vmul.f32 %v1065_v45, %v1065_v45  ;;  %v810_v33 = vadd.f32 %v809_v39, %v2177_v48 }
  0xef   : > { %1750 = vst [vmem:[%s2192_s29 + $0x20] sm:$0xff] %v1690_v50   ;;  %v2263_v34 = vadd.f32 %v1275_v38, %v1245_v53 }
  0xf1   : > { %v812_v21 = vpop.f32.mrf.mxu3 }
  0xf2   : > { %v2266_v47 = vadd.f32 %v812_v21, %v2198_v4  ;;  %v549_v54 = vpop.f32.mrf.mxu0  ;;  %v1001_v55 = vpop.f32.mrf.mxu2 }
  0xf3   : > { %v777_v22 = vpop.f32.mrf.mxu1  ;;  %v775_v56 = vadd.f32 %v774_v44, %v549_v54  ;;  %v1066_v35 = vadd.f32 %v1001_v55, %v773_v20 }
  0xf9   : > { %v814_v23 = vpop.f32.mrf.mxu3 }
  0xfa   : > { %v552_v24 = vpop.f32.mrf.mxu0  ;;  %v1003_v25 = vpop.f32.mrf.mxu2 }
  0xfb   : > { %v779_v1 = vpop.f32.mrf.mxu1  ;;  %v1067_v28 = vadd.f32 %v1003_v25, %v775_v56  ;;  %v778_v62 = vadd.f32 %v777_v22, %v552_v24  ;;  %v815_v22 = vadd.f32 %v814_v23, %v2214_v6 }
  0xfd   : > { %v1695_v58 = vpack.c.bf16 %v1067_v28, %v1066_v35 }
  0xff   : > { %1751 = vst [vmem:[%s2192_s29 + $0x28] sm:$0xff] %v1695_v58  }
 0x101   : > { %v817_v59 = vpop.f32.mrf.mxu3 }
 0x102   : > { %v2270_v51 = vadd.f32 %v817_v59, %v2225_v46  ;;  %v554_v4 = vpop.f32.mrf.mxu0  ;;  %v1006_v60 = vpop.f32.mrf.mxu2 }
 0x103   : > { %v782_v61 = vpop.f32.mrf.mxu1  ;;  %v780_v31 = vadd.f32 %v779_v1, %v554_v4  ;;  %v1068_v7 = vadd.f32 %v1006_v60, %v778_v62 }
 0x105   : > { %v1210_v23 = vadd.f32 %v2260_v52, %v1068_v7 }
 0x109   : > { %v2272_v63 = vpop.f32.mrf.mxu3 }
 0x10a   : > { %v557_v0 = vpop.f32.mrf.mxu0  ;;  %v1008_v2 = vpop.f32.mrf.mxu2 }
 0x10b   : > { %v784_v3 = vpop.f32.mrf.mxu1  ;;  %v2274_v8 = vadd.f32 %v1008_v2, %v780_v31  ;;  %v783_v15 = vadd.f32 %v782_v61, %v557_v0  ;;  %v1248_v0 = vmul.f32 %v1068_v7, %v1068_v7 }
 0x10d   : > { %v1700_v49 = vpack.c.bf16 %v2274_v8, %v1068_v7 }
 0x10f   : > { %1752 = vst [vmem:[%s2192_s29 + $0x30] sm:$0xff] %v1700_v49   ;;  %v1279_v49 = vadd.f32 %v2263_v34, %v1248_v0 }
 0x111   : > { %v822_v9 = vpop.f32.mrf.mxu3 }
 0x112   : > { %v2279_v46 = vadd.f32 %v822_v9, %v2252_v13  ;;  %v559_v10 = vpop.f32.mrf.mxu0  ;;  %v1011_v11 = vpop.f32.mrf.mxu2  ;;  %v1211_v9 = vadd.f32 %v1210_v23, %v2274_v8 }
 0x113   : > { %v787_v14 = vpop.f32.mrf.mxu1  ;;  %v785_v18 = vadd.f32 %v784_v3, %v559_v10  ;;  %v1070_v26 = vadd.f32 %v1011_v11, %v783_v15 }
 0x119   : > { %v2281_v16 = vpop.f32.mrf.mxu3 }
 0x11a   : > { %v562_v17 = vpop.f32.mrf.mxu0  ;;  %v1013_v19 = vpop.f32.mrf.mxu2 }
 0x11b   : > { %v1071_v41 = vadd.f32 %v1013_v19, %v785_v18  ;;  %v789_v5 = vpop.f32.mrf.mxu1  ;;  %v788_v37 = vadd.f32 %v787_v14, %v562_v17  ;;  %v820_v14 = vadd.f32 %v2272_v63, %v2241_v57 }
 0x11d   : > { %v1705_v29 = vpack.c.bf16 %v1071_v41, %v1070_v26 }
 0x11f   : > { %1753 = vst [vmem:[%s2192_s29 + $0x38] sm:$0xff] %v1705_v29  }
 0x121   : > { %v1036_v30 = vpop.f32.mrf.mxu3 }
 0x122   : > { %v564_v32 = vpop.f32.mrf.mxu0  ;;  %v1016_v13 = vpop.f32.mrf.mxu2  ;;  %v2286_v40 = vadd.f32 %v1036_v30, %v2258_v27 }
 0x123   : > { %v792_v36 = vpop.f32.mrf.mxu1  ;;  %v790_v44 = vadd.f32 %v789_v5, %v564_v32  ;;  %v1072_v53 = vadd.f32 %v1016_v13, %v788_v37 }
 0x125   : > { %v1252_v10 = vmul.f32 %v1072_v53, %v1072_v53  ;;  %v1214_v17 = vadd.f32 %v1211_v9, %v1072_v53 }
 0x129   : > { %v1038_v38 = vpop.f32.mrf.mxu3 }
 0x12a   : > { %v2288_v42 = vadd.f32 %v1038_v38, %v810_v33  ;;  %v567_v43 = vpop.f32.mrf.mxu0  ;;  %v1018_v45 = vpop.f32.mrf.mxu2 }
 0x12b   : > { %v1073_v21 = vadd.f32 %v1018_v45, %v790_v44  ;;  %v794_v39 = vpop.f32.mrf.mxu1  ;;  %v793_v20 = vadd.f32 %v792_v36, %v567_v43 }
 0x12c   : > { %v1730_v50 = vpack.c.bf16 %v2288_v42, %v2286_v40 }
 0x12d   : > { %v1710_v54 = vpack.c.bf16 %v1073_v21, %v1072_v53  ;;  %v1253_v18 = vmul.f32 %v1073_v21, %v1073_v21  ;;  %v1215_v41 = vadd.f32 %v1214_v17, %v1073_v21 }
 0x12e   : > { %1758 = vst [vmem:[%s2192_s29 + $0x60] sm:$0xff] %v1730_v50   ;;  %v1261_v50 = vmul.f32 %v2288_v42, %v2288_v42 }
 0x12f   : > { %1754 = vst [vmem:[%s2192_s29 + $0x40] sm:$0xff] %v1710_v54  }
 0x131   : > { %v1041_v48 = vpop.f32.mrf.mxu3 }
 0x132   : > { %v569_v55 = vpop.f32.mrf.mxu0  ;;  %v1021_v27 = vpop.f32.mrf.mxu2  ;;  %v1082_v56 = vadd.f32 %v1041_v48, %v2266_v47  ;;  %v1249_v47 = vmul.f32 %v2274_v8, %v2274_v8 }
 0x133   : > { %v795_v35 = vadd.f32 %v794_v39, %v569_v55  ;;  %v797_v28 = vpop.f32.mrf.mxu1  ;;  %v1074_v4 = vadd.f32 %v1021_v27, %v793_v20 }
 0x134   : > { %v1280_v15 = vadd.f32 %v1279_v49, %v1249_v47 }
 0x136   : > { %v1283_v26 = vadd.f32 %v1280_v15, %v1252_v10 }
 0x138   : > { %v1284_v30 = vadd.f32 %v1283_v26, %v1253_v18 }
 0x139   : > { %v1043_v24 = vpop.f32.mrf.mxu3 }
 0x13a   : > { %v1083_v25 = vadd.f32 %v1043_v24, %v815_v22  ;;  %v572_v1 = vpop.f32.mrf.mxu0  ;;  %v1023_v58 = vpop.f32.mrf.mxu2  ;;  %v825_v24 = vadd.f32 %v2281_v16, %v2254_v12 }
 0x13b   : > { %v1075_v60 = vadd.f32 %v1023_v58, %v795_v35  ;;  %v798_v31 = vadd.f32 %v797_v28, %v572_v1  ;;  %v799_v3 = vpop.f32.mrf.mxu1 }
 0x13c   : > { %v1735_v59 = vpack.c.bf16 %v1083_v25, %v1082_v56 }
 0x13d   : > { %v1715_v61 = vpack.c.bf16 %v1075_v60, %v1074_v4 }
 0x13e   : > { %1759 = vst [vmem:[%s2192_s29 + $0x68] sm:$0xff] %v1735_v59  }
 0x13f   : > { %1755 = vst [vmem:[%s2192_s29 + $0x48] sm:$0xff] %v1715_v61  }
 0x141   : > { %v1046_v62 = vpop.f32.mrf.mxu3 }
 0x142   : > { %v1026_v2 = vpop.f32.mrf.mxu2  ;;  %v574_v6 = vpop.f32.mrf.mxu0  ;;  %v1084_v52 = vadd.f32 %v1046_v62, %v2270_v51  ;;  %v1260_v51 = vmul.f32 %v2286_v40, %v2286_v40 }
 0x143   : > { %v1076_v11 = vadd.f32 %v1026_v2, %v798_v31  ;;  %v800_v34 = vadd.f32 %v799_v3, %v574_v6  ;;  %v802_v63 = vpop.f32.mrf.mxu1 }
 0x144   : > { %v1264_v48 = vmul.f32 %v1084_v52, %v1084_v52 }
 0x145   : > { %v1256_v5 = vmul.f32 %v1076_v11, %v1076_v11  ;;  %v1218_v32 = vadd.f32 %v1215_v41, %v1076_v11 }
 0x147   : > { %v1287_v33 = vadd.f32 %v1284_v30, %v1256_v5 }
 0x149   : > { %v1048_v19 = vpop.f32.mrf.mxu3 }
 0x14a   : > { %v1085_v7 = vadd.f32 %v1048_v19, %v820_v14  ;;  %v1028_v29 = vpop.f32.mrf.mxu2  ;;  %v577_v57 = vpop.f32.mrf.mxu0 }
 0x14b   : > { %v1077_v13 = vadd.f32 %v1028_v29, %v800_v34  ;;  %v803_v35 = vadd.f32 %v802_v63, %v577_v57 }
 0x14c   : > { %v1740_v8 = vpack.c.bf16 %v1085_v7, %v1084_v52  ;;  %v1265_v22 = vmul.f32 %v1085_v7, %v1085_v7 }
 0x14d   : > { %v1720_v36 = vpack.c.bf16 %v1077_v13, %v1076_v11  ;;  %v1219_v37 = vadd.f32 %v1218_v32, %v1077_v13  ;;  %v1257_v38 = vmul.f32 %v1077_v13, %v1077_v13 }
 0x14e   : > { %1760 = vst [vmem:[%s2192_s29 + $0x70] sm:$0xff] %v1740_v8  }
 0x14f   : > { %1756 = vst [vmem:[%s2192_s29 + $0x50] sm:$0xff] %v1720_v36   ;;  %v1222_v43 = vadd.f32 %v1219_v37, %v2286_v40  ;;  %v1288_v44 = vadd.f32 %v1287_v33, %v1257_v38  ;;  %v804_v40 = vpop.f32.mrf.mxu1 }
 0x151   : > { %v1051_v45 = vpop.f32.mrf.mxu3  ;;  %v1291_v53 = vadd.f32 %v1288_v44, %v1260_v51  ;;  %v1223_v21 = vadd.f32 %v1222_v43, %v2288_v42 }
 0x152   : > { %v1031_v54 = vpop.f32.mrf.mxu2  ;;  %v579_v56 = vpop.f32.mrf.mxu0  ;;  %v1086_v58 = vadd.f32 %v1051_v45, %v2279_v46 }
 0x153   : > { %v1226_v39 = vadd.f32 %v1223_v21, %v1084_v52  ;;  %v1292_v55 = vadd.f32 %v1291_v53, %v1261_v50  ;;  %v805_v60 = vadd.f32 %v804_v40, %v579_v56  ;;  %v1078_v2 = vadd.f32 %v1031_v54, %v803_v35 }
 0x155   : > { %v1227_v27 = vadd.f32 %v1226_v39, %v1085_v7  ;;  %v1295_v20 = vadd.f32 %v1292_v55, %v1264_v48 }
 0x157   : > { %v1230_v25 = vrot.slane %v1227_v27, 4  ;;  %v1296_v1 = vadd.f32 %v1295_v20, %v1265_v22 }
 0x159   : > { %v1053_v28 = vpop.f32.mrf.mxu3  ;;  %v1231_v59 = vadd.f32 %v1230_v25, %v1227_v27  ;;  %v1299_v4 = vrot.slane %v1296_v1, 4 }
 0x15a   : > { %v1087_v42 = vadd.f32 %v1053_v28, %v825_v24  ;;  %v1033_v61 = vpop.f32.mrf.mxu2 }
 0x15b   : > { %v1232_v0 = vrot.slane %v1231_v59, 2  ;;  %v1300_v31 = vadd.f32 %v1299_v4, %v1296_v1  ;;  %v1079_v12 = vadd.f32 %v1033_v61, %v805_v60 }
 0x15c   : > { %v1745_v62 = vpack.c.bf16 %v1087_v42, %v1086_v58 }
 0x15d   : > { %v1233_v16 = vadd.f32 %v1232_v0, %v1231_v59  ;;  %v1301_v6 = vrot.slane %v1300_v31, 2  ;;  %v1725_v23 = vpack.c.bf16 %v1079_v12, %v1078_v2 }
 0x15e   : > { %1761 = vst [vmem:[%s2192_s29 + $0x78] sm:$0xff] %v1745_v62  }
 0x15f   : > { %v1234_v47 = vrot.slane %v1233_v16, 1  ;;  %v1302_v3 = vadd.f32 %v1301_v6, %v1300_v31  ;;  %1757 = vst [vmem:[%s2192_s29 + $0x58] sm:$0xff] %v1725_v23   ;;  %1308 = sbr.rel (%p1645_p7) target bundleno = 359 (0x167), region = 32 }
 0x161   : > { %v1235_v49 = vadd.f32 %v1234_v47, %v1233_v16  ;;  %v1303_v46 = vrot.slane %v1302_v3, 1 }
 0x163   : > { %v1304_v9 = vadd.f32 %v1303_v46, %v1302_v3 }
 0x164   : > { %v1846_v10 = vmov 0.0  }
 0x165   : > { %1309 = vst [vmem:[%s1927_s12] sm:$0x1] %v1846_v10 }
 0x166   : > { %1310 = vst [vmem:[%s1936_s23] sm:$0x1] %v1846_v10 }
 0x167 PF:  {}
 0x16c   : > { %v1311_v11 = vld [vmem:[%s1927_s12] sm:$0x1] }
 0x16d   : > { %v1314_v14 = vld [vmem:[%s1936_s23] sm:$0x1]  ;;  %v1312_v15 = vadd.f32 %v1311_v11, %v1235_v49 }
 0x16e   : > { %v1315_v17 = vadd.f32 %v1314_v14, %v1304_v9 }
 0x16f   : > { %1313 = vst [vmem:[%s1927_s12] sm:$0x1] %v1312_v15 }
 0x170   : > { %1316 = vst [vmem:[%s1936_s23] sm:$0x1] %v1315_v17 }
 0x171 PF: > { %s15_s19 = sadd.s32 1, %s1844_s19   ;;  %s2346_s15 = smov %s1836_s17 }
 0x172   : > { %p12_p8 = scmp.ge.s32.totalorder %s15_s19, 6   ;;  %s2347_s16 = smov %s1840_s18 }
 0x173   : > { %s2348_s17 = smov %s2351_s20  ;;  %s2349_s18 = smov %s2355_s21 }
 0x174   :  { %14 = sbr.rel (!%p12_p8) target bundleno = 3 (0x3), region = 91 }

</bundles_post_ra>
